<compile_context>
chip_gen: v6e
topology: v6e:2x2x1
jax: 0.10.0
libtpu: 0.0.40
codegen_flags: <defaults>
</compile_context>

<pallas_src>
import functools
import math

import jax
import jax.numpy as jnp
from jax import lax
from jax.experimental import pallas as pl
from jax.experimental.pallas import tpu as pltpu

NUM_GROUPS = 4
GN_EPS = 1e-5
LANE = 128
TILE_N_MAX = 256     # node-row block cap (>=256 fills the 256-wide MXU on v6e/v7x)
TILE_K_MAX = 1024    # adjacency-contraction block cap (amortizes per-step overhead/DMA)
VMEM_LIMIT = 48 * 1024 * 1024   # <= v7x's 64 MiB physical; ample headroom on v5e/v6e


def _round_up(v, m):
    return (v + m - 1) // m * m


def _pow2_tile(cap, extent):
    """Largest power-of-two tile <= cap not exceeding the (128-padded) extent."""
    t = cap
    while t > extent:
        t //= 2
    return max(t, LANE)


def _pad2d(a, rows, cols):
    return jnp.pad(a, ((0, rows - a.shape[0]), (0, cols - a.shape[1])))


# ----------------------------- kernels --------------------------------------

def linear_relu_kernel(x_ref, w_ref, b_ref, out_ref, out_bf_ref):
    h = jnp.maximum(
        jnp.dot(x_ref[...], w_ref[...], preferred_element_type=jnp.float32)
        + b_ref[...], 0.0)
    out_ref[...] = h                            # f32 copy, kept for the residual
    out_bf_ref[...] = h.astype(jnp.bfloat16)    # bf16 copy streamed by SAGEConv1


def _sage_gn_epilogue(acc_ref, inv_deg_ref, h_self_ref, wl_ref, bl_ref, wr_ref,
                      p_ref, gamma_ref, beta_ref):
    """Shared SAGEConv(mean) epilogue: lin_l/lin_r + ReLU + fused GroupNorm."""
    f32 = jnp.float32
    bf16 = jnp.bfloat16
    agg = (acc_ref[...] * inv_deg_ref[...]).astype(bf16)        # mean aggregation
    h = (jnp.dot(agg, wl_ref[...], preferred_element_type=f32) + bl_ref[...]
         + jnp.dot(h_self_ref[...], wr_ref[...], preferred_element_type=f32))
    h = jnp.maximum(h, 0.0)
    # fused GroupNorm: per-group mean / E[x^2] via one (C,C) projection each
    mu = jnp.dot(h.astype(bf16), p_ref[...], preferred_element_type=f32)
    ex2 = jnp.dot((h * h).astype(bf16), p_ref[...], preferred_element_type=f32)
    var = jnp.maximum(ex2 - mu * mu, 0.0)
    return (h - mu) * lax.rsqrt(var + GN_EPS) * gamma_ref[...] + beta_ref[...]


def sage_gn_kernel(inv_deg_ref, adj_ref, h_nbr_ref, h_self_ref,
                   wl_ref, bl_ref, wr_ref, p_ref, gamma_ref, beta_ref,
                   out_ref, acc_ref):
    """SAGEConv(mean) + ReLU + GroupNorm; k axis accumulates the neighbor sum."""
    k = pl.program_id(1)

    @pl.when(k == 0)
    def _():
        acc_ref[...] = jnp.zeros_like(acc_ref)

    # neighbor-sum on the MXU: bf16 x bf16 -> f32 accumulate
    acc_ref[...] += jnp.dot(adj_ref[...], h_nbr_ref[...],
                            preferred_element_type=jnp.float32)

    @pl.when(k == pl.num_programs(1) - 1)
    def _():
        out_ref[...] = _sage_gn_epilogue(
            acc_ref, inv_deg_ref, h_self_ref, wl_ref, bl_ref, wr_ref,
            p_ref, gamma_ref, beta_ref).astype(out_ref.dtype)


def sage_gn_head_kernel(inv_deg_ref, adj_ref, h_nbr_ref, h_self_ref,
                        wl_ref, bl_ref, wr_ref, p_ref, gamma_ref, beta_ref,
                        res_ref, w2_ref, b2_ref, w3_ref, b3_ref,
                        out_ref, acc_ref, *, out_ch):
    """SAGEConv2 + ReLU + GroupNorm fused with residual + MLP head + log_softmax."""
    k = pl.program_id(1)

    @pl.when(k == 0)
    def _():
        acc_ref[...] = jnp.zeros_like(acc_ref)

    acc_ref[...] += jnp.dot(adj_ref[...], h_nbr_ref[...],
                            preferred_element_type=jnp.float32)

    @pl.when(k == pl.num_programs(1) - 1)
    def _():
        f32 = jnp.float32
        x = _sage_gn_epilogue(acc_ref, inv_deg_ref, h_self_ref, wl_ref, bl_ref,
                              wr_ref, p_ref, gamma_ref, beta_ref)
        x = x + res_ref[...]                                    # residual
        h = jnp.maximum(jnp.dot(x, w2_ref[...], preferred_element_type=f32)
                        + b2_ref[...], 0.0)                     # dropout = identity (eval)
        logits = jnp.dot(h, w3_ref[...], preferred_element_type=f32) + b3_ref[...]
        # exclude padded output lanes from the softmax
        col = lax.broadcasted_iota(jnp.int32, logits.shape, 1)
        logits = jnp.where(col < out_ch, logits, -1e30)
        m = jnp.max(logits, axis=1, keepdims=True)
        z = logits - m
        lse = jnp.log(jnp.sum(jnp.exp(z), axis=1, keepdims=True))
        out_ref[...] = z - lse


# ----------------------------- wrapper ---------------------------------------

def graphsage_forward(x, edge_index, params):
    """x: (N, in_channels) f32, edge_index: (2, E) int32 [src; dst]."""
    n, in_ch = x.shape
    hidden = params["w1"].shape[1]
    hid2 = params["w2"].shape[1]
    out_ch = params["w3"].shape[1]

    np128 = _round_up(n, LANE)
    tile_n = _pow2_tile(TILE_N_MAX, np128)       # row block; n_row >= 2 engages both
    tile_k = _pow2_tile(TILE_K_MAX, np128)       # v7x TensorCores when N > tile_n
    np_ = _round_up(np128, max(tile_n, tile_k))

    fp = _round_up(in_ch, LANE)
    hp = _round_up(hidden, LANE)
    h2p = _round_up(hid2, LANE)
    op = _round_up(out_ch, LANE)

    f32, bf16 = jnp.float32, jnp.bfloat16
    src, dst = edge_index[0], edge_index[1]

    # dense adjacency (messages flow src -> dst): A[dst, src] += 1
    # TODO(synk): for realistic graph sizes replace the O(N^2) dense adjacency with
    # CSR edge data (PrefetchScalarGridSpec row offsets + DMA gather of neighbor rows).
    adj_f32 = jnp.zeros((np_, np_), f32).at[dst, src].add(1.0)
    deg = jnp.sum(adj_f32, axis=1, keepdims=True)                  # in-degree, f32
    inv_deg = jnp.where(deg > 0.0, 1.0 / jnp.maximum(deg, 1.0), 0.0)
    adj = adj_f32.astype(bf16)   # small integer edge counts (<256) are exact in bf16
    # TODO(synk): on v7x a 0/1 adjacency could be stored as fp8 to halve its HBM stream.

    xp = _pad2d(x.astype(f32), np_, fp)

    w1 = _pad2d(params["w1"], fp, hp);   b1 = _pad2d(params["b1"], 1, hp)
    # SAGE / GroupNorm weights feed MXU epilogue matmuls -> keep them bf16.
    c1wl = _pad2d(params["c1_wl"], hp, hp).astype(bf16)
    c1wr = _pad2d(params["c1_wr"], hp, hp).astype(bf16)
    c2wl = _pad2d(params["c2_wl"], hp, hp).astype(bf16)
    c2wr = _pad2d(params["c2_wr"], hp, hp).astype(bf16)
    c1bl = _pad2d(params["c1_bl"], 1, hp)
    c2bl = _pad2d(params["c2_bl"], 1, hp)
    g1 = _pad2d(params["g1"], 1, hp);  be1 = _pad2d(params["be1"], 1, hp)
    g2 = _pad2d(params["g2"], 1, hp);  be2 = _pad2d(params["be2"], 1, hp)
    w2 = _pad2d(params["w2"], hp, h2p); b2 = _pad2d(params["b2"], 1, h2p)
    w3 = _pad2d(params["w3"], h2p, op); b3 = _pad2d(params["b3"], 1, op)

    # GroupNorm projection matrix from the REAL channel count (padded channels
    # excluded from group statistics); stays zero on padded rows/cols.
    gs = hidden // NUM_GROUPS
    grp = jnp.arange(hidden) // gs
    p_gn = _pad2d((grp[:, None] == grp[None, :]).astype(f32) / gs,
                  hp, hp).astype(bf16)

    n_row = np_ // tile_n
    n_k = np_ // tile_k

    cparams_1d = pltpu.CompilerParams(
        dimension_semantics=("parallel",), vmem_limit_bytes=VMEM_LIMIT)
    cparams_2d = pltpu.CompilerParams(
        dimension_semantics=("parallel", "arbitrary"),
        vmem_limit_bytes=VMEM_LIMIT)

    # TODO(synk): mark constant-index specs pipeline_mode=pl.Buffered(1) (and the
    # streamed adj/h_nbr specs Buffered(3)) once the target jax build supports
    # per-BlockSpec buffer counts on the TPU grid pipeline; at large hidden sizes
    # the double-buffered weights are the dominant VMEM cost on v7x.
    def const_spec(shape):
        return pl.BlockSpec(shape, lambda *_: (0,) * len(shape))

    # ---- stage 1: h0 = relu(x @ w1 + b1); emits f32 (residual) + bf16 copies -
    h0, h0_bf = pl.pallas_call(
        linear_relu_kernel,
        out_shape=(jax.ShapeDtypeStruct((np_, hp), f32),
                   jax.ShapeDtypeStruct((np_, hp), bf16)),
        grid=(n_row,),
        in_specs=[pl.BlockSpec((tile_n, fp), lambda i: (i, 0)),
                  const_spec((fp, hp)), const_spec((1, hp))],
        out_specs=(pl.BlockSpec((tile_n, hp), lambda i: (i, 0)),
                   pl.BlockSpec((tile_n, hp), lambda i: (i, 0))),
        compiler_params=cparams_1d,
    )(xp, w1, b1)

    # shared input specs for both SAGE blocks (row x contraction grid)
    sage_in_specs = [
        pl.BlockSpec((tile_n, 1), lambda i, k: (i, 0)),        # inv_deg (f32)
        pl.BlockSpec((tile_n, tile_k), lambda i, k: (i, k)),   # adj tile (bf16)
        pl.BlockSpec((tile_k, hp), lambda i, k: (k, 0)),       # neighbor rows (bf16)
        pl.BlockSpec((tile_n, hp), lambda i, k: (i, 0)),       # self rows (bf16)
        const_spec((hp, hp)), const_spec((1, hp)),             # wl, bl
        const_spec((hp, hp)),                                  # wr
        const_spec((hp, hp)),                                  # P (groupnorm)
        const_spec((1, hp)), const_spec((1, hp)),              # gamma, beta
    ]

    # ---- stage 2: SAGEConv1 + ReLU + GroupNorm1 -> bf16 features for conv2 --
    h1_bf = pl.pallas_call(
        sage_gn_kernel,
        out_shape=jax.ShapeDtypeStruct((np_, hp), bf16),
        grid=(n_row, n_k),
        in_specs=sage_in_specs,
        out_specs=pl.BlockSpec((tile_n, hp), lambda i, k: (i, 0)),
        scratch_shapes=[pltpu.VMEM((tile_n, hp), f32)],
        compiler_params=cparams_2d,
    )(inv_deg, adj, h0_bf, h0_bf, c1wl, c1bl, c1wr, p_gn, g1, be1)

    # ---- stage 3: SAGEConv2 + GroupNorm2 fused with residual + MLP head -----
    out_padded = pl.pallas_call(
        functools.partial(sage_gn_head_kernel, out_ch=out_ch),
        out_shape=jax.ShapeDtypeStruct((np_, op), f32),
        grid=(n_row, n_k),
        in_specs=sage_in_specs + [
            pl.BlockSpec((tile_n, hp), lambda i, k: (i, 0)),   # residual h0 (f32)
            const_spec((hp, h2p)), const_spec((1, h2p)),       # w2, b2
            const_spec((h2p, op)), const_spec((1, op)),        # w3, b3
        ],
        out_specs=pl.BlockSpec((tile_n, op), lambda i, k: (i, 0)),
        scratch_shapes=[pltpu.VMEM((tile_n, hp), f32)],
        compiler_params=cparams_2d,
    )(inv_deg, adj, h1_bf, h1_bf, c2wl, c2bl, c2wr, p_gn, g2, be2,
      h0, w2, b2, w3, b3)

    return out_padded[:n, :out_ch]


def make_params(key, in_channels, hidden, out_channels):
    def linear(key, fan_in, fan_out, bias=True):
        k1, k2 = jax.random.split(key)
        bound = 1.0 / math.sqrt(fan_in)
        w = jax.random.uniform(k1, (fan_in, fan_out), jnp.float32, -bound, bound)
        b = (jax.random.uniform(k2, (1, fan_out), jnp.float32, -bound, bound)
             if bias else None)
        return w, b

    keys = jax.random.split(key, 8)
    p = {}
    p["w1"], p["b1"] = linear(keys[0], in_channels, hidden)
    p["c1_wl"], p["c1_bl"] = linear(keys[1], hidden, hidden)       # lin_l (bias)
    p["c1_wr"], _ = linear(keys[2], hidden, hidden, bias=False)    # lin_r (no bias)
    p["c2_wl"], p["c2_bl"] = linear(keys[3], hidden, hidden)
    p["c2_wr"], _ = linear(keys[4], hidden, hidden, bias=False)
    p["g1"], p["be1"] = jnp.ones((1, hidden), jnp.float32), jnp.zeros((1, hidden), jnp.float32)
    p["g2"], p["be2"] = jnp.ones((1, hidden), jnp.float32), jnp.zeros((1, hidden), jnp.float32)
    p["w2"], p["b2"] = linear(keys[5], hidden, hidden // 2)
    p["w3"], p["b3"] = linear(keys[6], hidden // 2, out_channels)
    return p


if __name__ == "__main__":
    N, E = 64, 256
    IN_CH, HIDDEN, OUT_CH = 16, 32, 8

    key = jax.random.PRNGKey(0)
    kx, ke_src, ke_dst, kp = jax.random.split(key, 4)
    x = jax.random.normal(kx, (N, IN_CH), jnp.float32)
    edge_index = jnp.stack([
        jax.random.randint(ke_src, (E,), 0, N, jnp.int32),
        jax.random.randint(ke_dst, (E,), 0, N, jnp.int32),
    ])
    params = make_params(kp, IN_CH, HIDDEN, OUT_CH)

    # TODO(synk): dropout is stochastic in training mode; implemented as identity (eval mode).
    out = graphsage_forward(x, edge_index, params)
    jax.block_until_ready(out)
    assert out.shape == (N, OUT_CH)
    print("KERNEL_OK")
</pallas_src>

<mosaic_0001>
module attributes {stable_mosaic.version = 11 : i64} {
  func.func @linear_relu_kernel(%arg0: i32, %arg1: memref<128x128xf32, #tpu.memory_space<vmem>>, %arg2: memref<128x128xf32, #tpu.memory_space<vmem>>, %arg3: memref<1x128xf32, #tpu.memory_space<vmem>>, %arg4: memref<128x128xf32, #tpu.memory_space<vmem>>, %arg5: memref<128x128xbf16, #tpu.memory_space<vmem>>) attributes {dimension_semantics = [#tpu.dimension_semantics<parallel>], iteration_bounds = array<i64: 1>, scalar_prefetch = 0 : i64, scratch_operands = 0 : i64, tpu.core_type = #tpu.core_type<tc>, window_params = [{transform_indices = @transform_0, window_bounds = array<i64: 128, 128>}, {pipeline_mode = #tpu.pipeline_mode<synchronous>, transform_indices = @transform_1, window_bounds = array<i64: 128, 128>}, {pipeline_mode = #tpu.pipeline_mode<synchronous>, transform_indices = @transform_2, window_bounds = array<i64: 1, 128>}, {transform_indices = @transform_3, window_bounds = array<i64: 128, 128>}, {transform_indices = @transform_4, window_bounds = array<i64: 128, 128>}]} {
    %c0 = arith.constant 0 : index
    %c0_0 = arith.constant 0 : index
    %0 = vector.load %arg1[%c0, %c0_0] : memref<128x128xf32, #tpu.memory_space<vmem>>, vector<128x128xf32>
    %c0_1 = arith.constant 0 : index
    %c0_2 = arith.constant 0 : index
    %1 = vector.load %arg2[%c0_1, %c0_2] : memref<128x128xf32, #tpu.memory_space<vmem>>, vector<128x128xf32>
    %cst = arith.constant dense<0.000000e+00> : vector<128x128xf32>
    %2 = tpu.matmul %0, %1, %cst {dimension_numbers = #tpu.dot_dimension_numbers<[1], [0], [0], [1], [0, 0, 1, 1], [], []>} : vector<128x128xf32>, vector<128x128xf32>, vector<128x128xf32> -> vector<128x128xf32>
    %c0_3 = arith.constant 0 : index
    %c0_4 = arith.constant 0 : index
    %3 = vector.load %arg3[%c0_3, %c0_4] : memref<1x128xf32, #tpu.memory_space<vmem>>, vector<1x128xf32>
    %4 = vector.broadcast %3 : vector<1x128xf32> to vector<128x128xf32>
    %5 = arith.addf %2, %4 : vector<128x128xf32>
    %cst_5 = arith.constant 0.000000e+00 : f32
    %6 = vector.broadcast %cst_5 : f32 to vector<128x128xf32>
    %7 = arith.maximumf %5, %6 : vector<128x128xf32>
    %c0_6 = arith.constant 0 : index
    %c0_7 = arith.constant 0 : index
    %8 = vector.load %arg4[%c0_6, %c0_7] : memref<128x128xf32, #tpu.memory_space<vmem>>, vector<128x128xf32>
    tpu.vector_store %arg4[%c0_6, %c0_7], %7 {strides = array<i32>} : memref<128x128xf32, #tpu.memory_space<vmem>>, vector<128x128xf32>,
    %9 = arith.truncf %7 : vector<128x128xf32> to vector<128x128xbf16>
    %c0_8 = arith.constant 0 : index
    %c0_9 = arith.constant 0 : index
    %10 = vector.load %arg5[%c0_8, %c0_9] : memref<128x128xbf16, #tpu.memory_space<vmem>>, vector<128x128xbf16>
    tpu.vector_store %arg5[%c0_8, %c0_9], %9 {strides = array<i32>} : memref<128x128xbf16, #tpu.memory_space<vmem>>, vector<128x128xbf16>,
    return
  }
  func.func @transform_0(%arg0: i32) -> (i32, i32) {
    %c0_i32 = arith.constant 0 : i32
    %c0_i32_0 = arith.constant 0 : i32
    return %arg0, %c0_i32 : i32, i32
  }
  func.func @transform_1(%arg0: i32) -> (i32, i32) {
    %c0_i32 = arith.constant 0 : i32
    %c0_i32_0 = arith.constant 0 : i32
    %c0_i32_1 = arith.constant 0 : i32
    return %c0_i32, %c0_i32_0 : i32, i32
  }
  func.func @transform_2(%arg0: i32) -> (i32, i32) {
    %c0_i32 = arith.constant 0 : i32
    %c0_i32_0 = arith.constant 0 : i32
    %c0_i32_1 = arith.constant 0 : i32
    return %c0_i32, %c0_i32_0 : i32, i32
  }
  func.func @transform_3(%arg0: i32) -> (i32, i32) {
    %c0_i32 = arith.constant 0 : i32
    %c0_i32_0 = arith.constant 0 : i32
    return %arg0, %c0_i32 : i32, i32
  }
  func.func @transform_4(%arg0: i32) -> (i32, i32) {
    %c0_i32 = arith.constant 0 : i32
    %c0_i32_0 = arith.constant 0 : i32
    return %arg0, %c0_i32 : i32, i32
  }
}

</mosaic_0001>

<bundles_post_ra>
// kernel: tpu_custom_call.1
= control target key start
LH: loop header
LB: loop body
LE: loop exit
PB: predicated region body
PF: predicated region fallthrough
CT: control target
= control target key end

     0   :  { %10 = vsyncpa [#allocation3], 0  ;;  %s747_s0 = inlined_call_operand.hbm [shape: f32[128,128], index: 0, kind: input, shape index: {}]   ;;  %s748_s1 = inlined_call_operand.hbm [shape: f32[128,128], index: 1, kind: input, shape index: {}]   ;;  %s749_s2 = inlined_call_operand.vmem [shape: f32[1,128], index: 2, kind: input, shape index: {}]   ;;  %s750_s3 = inlined_call_operand.hbm [shape: f32[128,128], index: 3, kind: output, shape index: {0}]   ;;  %s751_s4 = inlined_call_operand.hbm [shape: bf16[128,128], index: 4, kind: output, shape index: {1}]  }
   0x1   :  { %11 = vsyncpa [#allocation6], 0 }
   0x2   :  { %12 = vsyncpa [#allocation4], 0 }
   0x3   :  { %13 = vsyncpa [#allocation9], 0  ;;  %s672_s15 = smov [#allocation2]  }
   0x4   :  { %s19_s16 = sshll.u32 %s672_s15, 4  ;;  %s20_s16 = int_to_ptr.vmem [resolvable:$true] %s19_s16 }
   0x5   :  { %s592_s17 = scalar_lea.vmem %s20_s16, 2048  ;;  %p597_p1 = scmp.lt.s32.totalorder %s20_s16, %s20_s16 }
   0x6   :  { %p593_p0 = scmp.ne.s32.totalorder %s20_s16, %s592_s17  ;;  %p598_p2 = scmp.lt.s32.totalorder %s592_s17, %s592_s17 }
   0x8   :  { %p599_p3 = por %p598_p2, %p597_p1 }
   0xa   :  { %p600_p4 = pnand %p599_p3, %p593_p0 }
   0xc   :  { %603 = shalt.err (!%p600_p4)
}
   0xd   :  { %s673_s18 = smov 128   ;;  %s674_s19 = smov 8  }
   0xe   :  { %25 = dma.hbm_to_vmem [thread:$0]  %s747_s0, 2048, %s20_s16, [#allocation3], %s673_s18, %s673_s18, %s674_s19  }
   0xf   :  { %s675_s22 = smov [#allocation5]  }
  0x10   :  { %s31_s23 = sshll.u32 %s675_s22, 4  ;;  %s32_s23 = int_to_ptr.vmem [resolvable:$true] %s31_s23 }
  0x11   :  { %s612_s24 = scalar_lea.vmem %s32_s23, 2048  ;;  %p617_p6 = scmp.lt.s32.totalorder %s32_s23, %s32_s23 }
  0x12   :  { %p613_p5 = scmp.ne.s32.totalorder %s32_s23, %s612_s24  ;;  %p618_p7 = scmp.lt.s32.totalorder %s612_s24, %s612_s24 }
  0x14   :  { %p619_p8 = por %p618_p7, %p617_p6 }
  0x16   :  { %p620_p9 = pnand %p619_p8, %p613_p5 }
  0x18   :  { %623 = shalt.err (!%p620_p9)
}
  0x19   :  { %37 = dma.hbm_to_vmem [thread:$0]  %s748_s1, 2048, %s32_s23, [#allocation6], %s673_s18, %s673_s18, %s674_s19  }
  0x1a   :  { %664 = dma.done.wait [#allocation3], 2048  }
  0x1b   :  { %665 = vsyncadd [#allocation3], 4294965248 }
  0x1c   :  { %666 = dma.done.wait [#allocation6], 2048  }
  0x1d   :  { %667 = vsyncadd [#allocation6], 4294965248  ;;  %v77_v0 = vld [vmem:[#allocation5 + $0x78] sm:$0xff]  ;;  %v76_v1 = vld [vmem:[#allocation5 + $0x70] sm:$0xff]  ;;  %s677_s28 = smov [#allocation8]  }
  0x1e   :  { %488 = vmatprep.subr.mxu0 %v77_v0  ;;  %544 = vmatprep.subr.mxu1 %v77_v0  ;;  %v75_v2 = vld [vmem:[#allocation5 + $0x68] sm:$0xff]  ;;  %v74_v3 = vld [vmem:[#allocation5 + $0x60] sm:$0xff]  ;;  %v73_v4 = vld [vmem:[#allocation5 + $0x58] sm:$0xff]  ;;  %s359_s29 = sshll.u32 %s677_s28, 4  ;;  %s360_s29 = int_to_ptr.vmem [resolvable:$true] %s359_s29 }
  0x1f   :  { %489 = vmatpush3.msra.mxu0 %v77_v0  ;;  %560 = vmatpush3.msra.mxu1 %v77_v0  ;;  %v72_v5 = vld [vmem:[#allocation5 + $0x50] sm:$0xff]  ;;  %v71_v6 = vld [vmem:[#allocation5 + $0x48] sm:$0xff]  ;;  %v70_v7 = vld [vmem:[#allocation5 + $0x40] sm:$0xff] }
  0x20   :  { %490 = vmatprep.subr.mxu0 %v76_v1  ;;  %545 = vmatprep.subr.mxu1 %v76_v1  ;;  %v69_v8 = vld [vmem:[#allocation5 + $0x38] sm:$0xff]  ;;  %v68_v9 = vld [vmem:[#allocation5 + $0x30] sm:$0xff]  ;;  %v67_v10 = vld [vmem:[#allocation5 + $0x28] sm:$0xff] }
  0x21   :  { %491 = vmatpush3.msra.mxu0 %v76_v1  ;;  %561 = vmatpush3.msra.mxu1 %v76_v1  ;;  %v66_v11 = vld [vmem:[#allocation5 + $0x20] sm:$0xff]  ;;  %v65_v12 = vld [vmem:[#allocation5 + $0x18] sm:$0xff]  ;;  %v64_v13 = vld [vmem:[#allocation5 + $0x10] sm:$0xff] }
  0x22   :  { %492 = vmatprep.subr.mxu0 %v75_v2  ;;  %546 = vmatprep.subr.mxu1 %v75_v2  ;;  %v63_v14 = vld [vmem:[#allocation5 + $0x8] sm:$0xff]  ;;  %v62_v15 = vld [vmem:[#allocation5] sm:$0xff]  ;;  %v48_v20 = vld [vmem:[#allocation2 + $0x10] sm:$0xff] }
  0x23   :  { %493 = vmatpush3.msra.mxu0 %v75_v2  ;;  %562 = vmatpush3.msra.mxu1 %v75_v2  ;;  %v46_v16 = vld [vmem:[#allocation2] sm:$0xff]  ;;  %v47_v18 = vld [vmem:[#allocation2 + $0x8] sm:$0xff]  ;;  %v56_v21 = vld [vmem:[#allocation2 + $0x50] sm:$0xff] }
  0x24   :  { %494 = vmatprep.subr.mxu0 %v74_v3  ;;  %547 = vmatprep.subr.mxu1 %v74_v3  ;;  %v54_v17 = vld [vmem:[#allocation2 + $0x40] sm:$0xff]  ;;  %v55_v19 = vld [vmem:[#allocation2 + $0x48] sm:$0xff]  ;;  %v49_v22 = vld [vmem:[#allocation2 + $0x18] sm:$0xff] }
  0x25   :  { %495 = vmatpush3.msra.mxu0 %v74_v3  ;;  %563 = vmatpush3.msra.mxu1 %v74_v3  ;;  %v57_v23 = vld [vmem:[#allocation2 + $0x58] sm:$0xff]  ;;  %v50_v24 = vld [vmem:[#allocation2 + $0x20] sm:$0xff]  ;;  %v51_v26 = vld [vmem:[#allocation2 + $0x28] sm:$0xff] }
  0x26   :  { %496 = vmatprep.subr.mxu0 %v73_v4  ;;  %548 = vmatprep.subr.mxu1 %v73_v4  ;;  %v58_v25 = vld [vmem:[#allocation2 + $0x60] sm:$0xff]  ;;  %v59_v27 = vld [vmem:[#allocation2 + $0x68] sm:$0xff]  ;;  %v52_v28 = vld [vmem:[#allocation2 + $0x30] sm:$0xff] }
  0x27   :  { %497 = vmatpush3.msra.mxu0 %v73_v4  ;;  %564 = vmatpush3.msra.mxu1 %v73_v4  ;;  %v60_v29 = vld [vmem:[#allocation2 + $0x70] sm:$0xff]  ;;  %v53_v30 = vld [vmem:[#allocation2 + $0x38] sm:$0xff]  ;;  %v720_v32 = vld [vmem:[%s749_s2] ss:$0 sm:$0xff]  ;;  %s676_s2 = smov [#allocation7]  }
  0x28   :  { %498 = vmatprep.subr.mxu0 %v72_v5  ;;  %549 = vmatprep.subr.mxu1 %v72_v5  ;;  %v61_v31 = vld [vmem:[#allocation2 + $0x78] sm:$0xff]  ;;  %s347_s27 = sshll.u32 %s676_s2, 4  ;;  %s348_s27 = int_to_ptr.vmem [resolvable:$true] %s347_s27 }
  0x29   :  { %499 = vmatpush3.msra.mxu0 %v72_v5  ;;  %565 = vmatpush3.msra.mxu1 %v72_v5  ;;  %s624_s30 = scalar_lea.vmem %s348_s27, 2048  ;;  %p629_p11 = scmp.lt.s32.totalorder %s348_s27, %s348_s27 }
  0x2a   :  { %500 = vmatprep.subr.mxu0 %v71_v6  ;;  %550 = vmatprep.subr.mxu1 %v71_v6  ;;  %p625_p10 = scmp.ne.s32.totalorder %s348_s27, %s624_s30  ;;  %p630_p12 = scmp.lt.s32.totalorder %s624_s30, %s624_s30 }
  0x2b   :  { %501 = vmatpush3.msra.mxu0 %v71_v6  ;;  %566 = vmatpush3.msra.mxu1 %v71_v6 }
  0x2c   :  { %502 = vmatprep.subr.mxu0 %v70_v7  ;;  %551 = vmatprep.subr.mxu1 %v70_v7  ;;  %p631_p13 = por %p630_p12, %p629_p11 }
  0x2d   :  { %503 = vmatpush3.msra.mxu0 %v70_v7  ;;  %567 = vmatpush3.msra.mxu1 %v70_v7 }
  0x2e   :  { %504 = vmatprep.subr.mxu0 %v69_v8  ;;  %552 = vmatprep.subr.mxu1 %v69_v8  ;;  %p632_p0 = pnand %p631_p13, %p625_p10 }
  0x2f   :  { %505 = vmatpush3.msra.mxu0 %v69_v8  ;;  %568 = vmatpush3.msra.mxu1 %v69_v8 }
  0x30   :  { %506 = vmatprep.subr.mxu0 %v68_v9  ;;  %553 = vmatprep.subr.mxu1 %v68_v9 }
  0x31   :  { %507 = vmatpush3.msra.mxu0 %v68_v9  ;;  %569 = vmatpush3.msra.mxu1 %v68_v9 }
  0x32   :  { %508 = vmatprep.subr.mxu0 %v67_v10  ;;  %554 = vmatprep.subr.mxu1 %v67_v10 }
  0x33   :  { %509 = vmatpush3.msra.mxu0 %v67_v10  ;;  %570 = vmatpush3.msra.mxu1 %v67_v10 }
  0x34   :  { %510 = vmatprep.subr.mxu0 %v66_v11  ;;  %555 = vmatprep.subr.mxu1 %v66_v11 }
  0x35   :  { %511 = vmatpush3.msra.mxu0 %v66_v11  ;;  %571 = vmatpush3.msra.mxu1 %v66_v11 }
  0x36   :  { %512 = vmatprep.subr.mxu0 %v65_v12  ;;  %556 = vmatprep.subr.mxu1 %v65_v12 }
  0x37   :  { %513 = vmatpush3.msra.mxu0 %v65_v12  ;;  %572 = vmatpush3.msra.mxu1 %v65_v12 }
  0x38   :  { %514 = vmatprep.subr.mxu0 %v64_v13  ;;  %557 = vmatprep.subr.mxu1 %v64_v13 }
  0x39   :  { %515 = vmatpush3.msra.mxu0 %v64_v13  ;;  %573 = vmatpush3.msra.mxu1 %v64_v13 }
  0x3a   :  { %516 = vmatprep.subr.mxu0 %v63_v14  ;;  %558 = vmatprep.subr.mxu1 %v63_v14 }
  0x3b   :  { %517 = vmatpush3.msra.mxu0 %v63_v14  ;;  %574 = vmatpush3.msra.mxu1 %v63_v14 }
  0x3c   :  { %518 = vmatprep.subr.mxu0 %v62_v15  ;;  %559 = vmatprep.subr.mxu1 %v62_v15 }
  0x3d   :  { %519 = vmatpush3.msra.mxu0 %v62_v15  ;;  %575 = vmatpush3.msra.mxu1 %v62_v15 }
  0x3e   :  { %520 = vmatprep.mubr.f32.mxu0 %v46_v16  ;;  %532 = vmatprep.mubr.f32.mxu1 %v54_v17 }
  0x3f   :  { %521 = vmatmul.mubr.f32.vlgmr.msra.gmra.mxu0 %v47_v18  ;;  %533 = vmatmul.mubr.f32.vlgmr.msra.gmra.mxu1 %v55_v19 }
  0x40   :  { %523 = vmatprep.mubr.f32.mxu0 %v48_v20  ;;  %535 = vmatprep.mubr.f32.mxu1 %v56_v21 }
  0x43   :  { %524 = vmatmul.mubr.f32.gmra.mxu0 %v49_v22  ;;  %536 = vmatmul.mubr.f32.gmra.mxu1 %v57_v23 }
  0x44   :  { %526 = vmatprep.mubr.f32.mxu0 %v50_v24  ;;  %538 = vmatprep.mubr.f32.mxu1 %v58_v25 }
  0x47   :  { %527 = vmatmul.mubr.f32.gmra.mxu0 %v51_v26  ;;  %539 = vmatmul.mubr.f32.gmra.mxu1 %v59_v27 }
  0x48   :  { %529 = vmatprep.mubr.f32.mxu0 %v52_v28  ;;  %541 = vmatprep.mubr.f32.mxu1 %v60_v29 }
  0x4b   :  { %530 = vmatmul.mubr.f32.gmra.mxu0 %v53_v30  ;;  %542 = vmatmul.mubr.f32.gmra.mxu1 %v61_v31 }
  0xff   :  { %v522_v33 = vpop.f32.mrf.mxu0  ;;  %v534_v34 = vpop.f32.mrf.mxu1 }
 0x100   :  { %v157_v35 = vadd.f32 %v522_v33, %v720_v32  ;;  %v197_v36 = vadd.f32 %v534_v34, %v720_v32 }
 0x101   :  { %v151_v37 = vpop.f32.mrf.mxu0  ;;  %v191_v38 = vpop.f32.mrf.mxu1 }
 0x102   :  { %v231_v39 = vmax.f32 %v157_v35, 0.0  ;;  %v239_v40 = vmax.f32 %v197_v36, 0.0  ;;  %v152_v41 = vadd.f32 %v720_v32, %v151_v37  ;;  %v192_v42 = vadd.f32 %v720_v32, %v191_v38 }
 0x103   :  { %v525_v43 = vpop.f32.mrf.mxu0  ;;  %v537_v44 = vpop.f32.mrf.mxu1 }
 0x104   :  { %247 = vst [vmem:[#allocation7 + $0x8] sm:$0xff] %v231_v39  ;;  %255 = vst [vmem:[#allocation7 + $0x48] sm:$0xff] %v239_v40  ;;  %v230_v45 = vmax.f32 %v152_v41, 0.0  ;;  %v238_v46 = vmax.f32 %v192_v42, 0.0  ;;  %v167_v47 = vadd.f32 %v525_v43, %v720_v32  ;;  %v207_v48 = vadd.f32 %v537_v44, %v720_v32 }
 0x105   :  { %v161_v49 = vpop.f32.mrf.mxu0  ;;  %v201_v50 = vpop.f32.mrf.mxu1 }
 0x106   :  { %246 = vst [vmem:[#allocation7] sm:$0xff] %v230_v45  ;;  %v412_v51 = vpack.c.bf16 %v231_v39, %v230_v45  ;;  %254 = vst [vmem:[#allocation7 + $0x40] sm:$0xff] %v238_v46  ;;  %v432_v52 = vpack.c.bf16 %v239_v40, %v238_v46  ;;  %v233_v53 = vmax.f32 %v167_v47, 0.0  ;;  %v241_v54 = vmax.f32 %v207_v48, 0.0 }
 0x107   :  { %v162_v55 = vadd.f32 %v720_v32, %v161_v49  ;;  %v202_v56 = vadd.f32 %v720_v32, %v201_v50  ;;  %v528_v57 = vpop.f32.mrf.mxu0  ;;  %v540_v58 = vpop.f32.mrf.mxu1 }
 0x108   :  { %413 = vst [vmem:[#allocation8] sm:$0xff] %v412_v51   ;;  %452 = vst [vmem:[#allocation8 + $0x20] sm:$0xff] %v432_v52   ;;  %v177_v59 = vadd.f32 %v528_v57, %v720_v32  ;;  %v217_v60 = vadd.f32 %v540_v58, %v720_v32 }
 0x109   :  { %249 = vst [vmem:[#allocation7 + $0x18] sm:$0xff] %v233_v53  ;;  %257 = vst [vmem:[#allocation7 + $0x58] sm:$0xff] %v241_v54  ;;  %v232_v61 = vmax.f32 %v162_v55, 0.0  ;;  %v240_v62 = vmax.f32 %v202_v56, 0.0  ;;  %v171_v63 = vpop.f32.mrf.mxu0  ;;  %v211_v0 = vpop.f32.mrf.mxu1 }
 0x10a   :  { %v235_v1 = vmax.f32 %v177_v59, 0.0  ;;  %v243_v2 = vmax.f32 %v217_v60, 0.0  ;;  %v172_v3 = vadd.f32 %v720_v32, %v171_v63  ;;  %v212_v4 = vadd.f32 %v720_v32, %v211_v0 }
 0x10b   :  { %248 = vst [vmem:[#allocation7 + $0x10] sm:$0xff] %v232_v61  ;;  %v417_v5 = vpack.c.bf16 %v233_v53, %v232_v61  ;;  %256 = vst [vmem:[#allocation7 + $0x50] sm:$0xff] %v240_v62  ;;  %v437_v6 = vpack.c.bf16 %v241_v54, %v240_v62  ;;  %v531_v7 = vpop.f32.mrf.mxu0  ;;  %v543_v8 = vpop.f32.mrf.mxu1 }
 0x10c   :  { %251 = vst [vmem:[#allocation7 + $0x28] sm:$0xff] %v235_v1  ;;  %259 = vst [vmem:[#allocation7 + $0x68] sm:$0xff] %v243_v2  ;;  %v234_v9 = vmax.f32 %v172_v3, 0.0  ;;  %v242_v10 = vmax.f32 %v212_v4, 0.0  ;;  %v187_v11 = vadd.f32 %v531_v7, %v720_v32  ;;  %v227_v12 = vadd.f32 %v543_v8, %v720_v32 }
 0x10d   :  { %449 = vst [vmem:[#allocation8 + $0x8] sm:$0xff] %v417_v5   ;;  %453 = vst [vmem:[#allocation8 + $0x28] sm:$0xff] %v437_v6   ;;  %v181_v13 = vpop.f32.mrf.mxu0  ;;  %v221_v14 = vpop.f32.mrf.mxu1 }
 0x10e   :  { %250 = vst [vmem:[#allocation7 + $0x20] sm:$0xff] %v234_v9  ;;  %v422_v15 = vpack.c.bf16 %v235_v1, %v234_v9  ;;  %258 = vst [vmem:[#allocation7 + $0x60] sm:$0xff] %v242_v10  ;;  %v442_v16 = vpack.c.bf16 %v243_v2, %v242_v10  ;;  %v237_v17 = vmax.f32 %v187_v11, 0.0  ;;  %v245_v18 = vmax.f32 %v227_v12, 0.0 }
 0x10f   :  { %v182_v19 = vadd.f32 %v720_v32, %v181_v13  ;;  %v222_v20 = vadd.f32 %v720_v32, %v221_v14 }
 0x110   :  { %450 = vst [vmem:[#allocation8 + $0x10] sm:$0xff] %v422_v15   ;;  %454 = vst [vmem:[#allocation8 + $0x30] sm:$0xff] %v442_v16  }
 0x111   :  { %253 = vst [vmem:[#allocation7 + $0x38] sm:$0xff] %v237_v17  ;;  %261 = vst [vmem:[#allocation7 + $0x78] sm:$0xff] %v245_v18  ;;  %v236_v21 = vmax.f32 %v182_v19, 0.0  ;;  %v244_v22 = vmax.f32 %v222_v20, 0.0 }
 0x113   :  { %252 = vst [vmem:[#allocation7 + $0x30] sm:$0xff] %v236_v21  ;;  %v427_v23 = vpack.c.bf16 %v237_v17, %v236_v21  ;;  %260 = vst [vmem:[#allocation7 + $0x70] sm:$0xff] %v244_v22  ;;  %v447_v24 = vpack.c.bf16 %v245_v18, %v244_v22 }
 0x114   :  { %635 = shalt.err (!%p632_p0)
}
 0x115   :  { %353 = dma.vmem_to_hbm [thread:$0]  %s348_s27, 2048, %s750_s3, [#allocation4], %s673_s18, %s673_s18, %s674_s19   ;;  %451 = vst [vmem:[#allocation8 + $0x18] sm:$0xff] %v427_v23   ;;  %455 = vst [vmem:[#allocation8 + $0x38] sm:$0xff] %v447_v24  }
 0x116   :  { %s644_s7 = scalar_lea.vmem %s360_s29, 1024  ;;  %p649_p2 = scmp.lt.s32.totalorder %s360_s29, %s360_s29 }
 0x117   :  { %p645_p1 = scmp.ne.s32.totalorder %s360_s29, %s644_s7  ;;  %p650_p3 = scmp.lt.s32.totalorder %s644_s7, %s644_s7 }
 0x119   :  { %p651_p4 = por %p650_p3, %p649_p2 }
 0x11b   :  { %p652_p5 = pnand %p651_p4, %p645_p1 }
 0x11d   :  { %655 = shalt.err (!%p652_p5)
}
 0x11e   :  { %s678_s8 = smov 64   ;;  %s679_s9 = smov 4  }
 0x11f   :  { %365 = dma.vmem_to_hbm [thread:$0]  %s360_s29, 1024, %s751_s4, [#allocation9], %s678_s8, %s678_s8, %s679_s9  }
 0x120   :  { %668 = dma.done.wait [#allocation4], 2048  }
 0x121   :  { %669 = vsyncadd [#allocation4], 4294965248 }
 0x122   :  { %670 = dma.done.wait [#allocation9], 1024  }
 0x123   :  { %671 = vsyncadd [#allocation9], 4294966272 }
 0x124   :  { %372 = vsyncpa [#allocation3], 1 }
 0x125   :  { %373 = vsyncpa [#allocation6], 1 }
 0x126   :  { %374 = vsyncpa [#allocation4], 1 }
 0x127   :  { %375 = vsyncpa [#allocation9], 1 }

</bundles_post_ra>
